<compile_context>
chip_gen: v7x
topology: tpu7x:2x2x1
jax: 0.10.0
libtpu: 0.0.40
codegen_flags: <defaults>
</compile_context>

<pallas_src>
import functools
import math

import jax
import jax.numpy as jnp
from jax.experimental import pallas as pl
from jax.experimental.pallas import tpu as pltpu

_HEAD_PAD = 128   # lane-dense logits width (4 heads x 10 classes, padded 40 -> 128)
_ACC_ROWS = 8     # GAP partial sums kept as an (8, C) sublane-aligned accumulator


def _round_up(x, m):
    return ((x + m - 1) // m) * m


# ---------------------------------------------------------------------------
# Fused Pallas kernel: conv tile matmul (+folded bias) + ReLU + GAP accumulation
#                      + fused 4-head matmul on the last HW tile
# ---------------------------------------------------------------------------
def _fused_conv_gap_heads_kernel(p_ref, wc_ref, wh_ref, bh_ref,
                                 feat_ref, logits_ref, acc_ref, *, inv_hw):
    """One grid step = (batch image b, pixel-row tile t).

    p_ref      : (TM, K)    bf16  im2col patches (27 taps + constant-1 bias column)
    wc_ref     : (K, C)     bf16  conv weights, bias folded in as the last row
    wh_ref     : (C, NH)    bf16  fused head weights (lane-padded to NH=128)
    bh_ref     : (1, NH)    f32   fused head bias (padded)
    feat_ref   : (1, 1, C)  f32   GAP feature output for image b
    logits_ref : (1, 1, NH) f32   fused head logits for image b
    acc_ref    : (8, C)     f32   GAP partial sums (VMEM scratch, persists over t)
    """
    t = pl.program_id(1)

    @pl.when(t == 0)
    def _init():
        acc_ref[...] = jnp.zeros_like(acc_ref)

    # Conv tile on the MXU (bias is part of the K=28 contraction); ReLU on the VPU.
    conv = jnp.dot(p_ref[...], wc_ref[...], preferred_element_type=jnp.float32)
    conv = jnp.maximum(conv, 0.0)                                    # (TM, C) f32

    # GAP partial sums: sublane-aligned VALU adds into an (8, C) accumulator.
    # The single cross-sublane (XLU) reduce is deferred to the finalize step.
    tm, c = conv.shape
    acc_ref[...] += jnp.sum(conv.reshape(tm // _ACC_ROWS, _ACC_ROWS, c), axis=0)

    @pl.when(t == pl.num_programs(1) - 1)
    def _finalize():
        feat = jnp.sum(acc_ref[...], axis=0, keepdims=True) * inv_hw     # (1, C)
        feat_ref[0] = feat.astype(feat_ref.dtype)
        logits = jnp.dot(feat.astype(wh_ref.dtype), wh_ref[...],
                         preferred_element_type=jnp.float32)
        logits_ref[0] = (logits + bh_ref[...]).astype(logits_ref.dtype)


# ---------------------------------------------------------------------------
# Wrapper: layout conversion, im2col (+ones column), tiling, pallas_call
# ---------------------------------------------------------------------------
def fused_backbone_heads(x_nchw, conv_w, conv_b, heads_w, heads_b, *, tm_max=2048):
    """conv3x3(pad=1)+ReLU -> global-avg-pool -> fused 4-head linear, one pallas_call.

    x_nchw: (B, Cin, H, W) f32; conv_w: (C, Cin, 3, 3); conv_b: (C,)
    heads_w: (C, 40); heads_b: (40,)
    Returns feat (B, C) f32 and logits (B, 40) f32.
    """
    B, Cin, H, W = x_nchw.shape
    HW = H * W
    C = conv_w.shape[0]
    K = 9 * Cin + 1                      # 27 taps + constant-1 bias column

    # --- HW tiling via cdiv + zero-row padding (exact: padded rows have a 0 in the
    # bias column too, so conv = ReLU(0) = 0 and they never touch the GAP sum). -----
    TM = _round_up(min(tm_max, _round_up(HW, _ACC_ROWS)), _ACC_ROWS)
    HWp = _round_up(HW, TM)
    nT = HWp // TM
    # NOTE: if tm_max is ever raised past ~2048, set CompilerParams(vmem_limit_bytes=...)
    # explicitly for v5e (16 MiB scoped-VMEM default).

    # --- im2col in the wrapper (cheap for Cin=3; see TODO at top of file) ----------
    x = jnp.transpose(x_nchw, (0, 2, 3, 1))                           # NHWC
    xp = jnp.pad(x, ((0, 0), (1, 1), (1, 1), (0, 0)))
    taps = jnp.concatenate(
        [xp[:, i:i + H, j:j + W, :] for i in range(3) for j in range(3)], axis=-1)
    patches = taps.reshape(B, HW, 9 * Cin)
    patches = jnp.concatenate(
        [patches, jnp.ones((B, HW, 1), patches.dtype)], axis=-1).astype(jnp.bfloat16)
    patches = jnp.pad(patches, ((0, 0), (0, HWp - HW), (0, 0)))
    patches = patches.reshape(B * HWp, K)

    # Conv weights in im2col layout, bias folded in as the last row (bf16, f32 acc).
    wc = jnp.transpose(conv_w, (2, 3, 1, 0)).reshape(9 * Cin, C)
    wc = jnp.concatenate([wc, conv_b.reshape(1, C)], axis=0).astype(jnp.bfloat16)

    # Fused head weights, lane-padded 40 -> 128 for unmasked full-lane stores; bf16.
    n_logits = heads_w.shape[1]
    wh = jnp.zeros((C, _HEAD_PAD), jnp.float32).at[:, :n_logits].set(heads_w)
    wh = wh.astype(jnp.bfloat16)
    bh = jnp.zeros((1, _HEAD_PAD), jnp.float32).at[:, :n_logits].set(
        heads_b.reshape(1, -1))

    kernel = functools.partial(_fused_conv_gap_heads_kernel, inv_hw=1.0 / HW)

    cost = pl.CostEstimate(
        flops=2 * B * HWp * K * C + 2 * B * C * _HEAD_PAD,
        transcendentals=0,
        bytes_accessed=(patches.size * 2 + wc.size * 2 + wh.size * 2 + bh.size * 4
                        + B * C * 4 + B * _HEAD_PAD * 4),
    )

    feat3, logits3 = pl.pallas_call(
        kernel,
        out_shape=(
            jax.ShapeDtypeStruct((B, 1, C), jnp.float32),
            jax.ShapeDtypeStruct((B, 1, _HEAD_PAD), jnp.float32),
        ),
        grid=(B, nT),
        in_specs=[
            pl.BlockSpec((TM, K), lambda b, t: (b * nT + t, 0)),       # patch rows of image b
            pl.BlockSpec((K, C), lambda b, t: (0, 0)),                 # conv weights (resident)
            pl.BlockSpec((C, _HEAD_PAD), lambda b, t: (0, 0)),         # fused head weights
            pl.BlockSpec((1, _HEAD_PAD), lambda b, t: (0, 0)),         # fused head bias
        ],
        out_specs=(
            pl.BlockSpec((1, 1, C), lambda b, t: (b, 0, 0)),
            pl.BlockSpec((1, 1, _HEAD_PAD), lambda b, t: (b, 0, 0)),
        ),
        scratch_shapes=[pltpu.VMEM((_ACC_ROWS, C), jnp.float32)],
        # HW axis MUST be "arbitrary" (and innermost): the acc scratch carries across it.
        compiler_params=pltpu.CompilerParams(
            dimension_semantics=("parallel", "arbitrary")),
        cost_estimate=cost,
    )(patches, wc, wh, bh)

    feat = feat3.reshape(B, C)
    logits = logits3.reshape(B, _HEAD_PAD)[:, :n_logits]
    return feat, logits


# ---------------------------------------------------------------------------
# Parameters (mirrors the four separate nn.Linear heads of the PyTorch module)
# ---------------------------------------------------------------------------
def init_params(key, in_channels=3, feat_dim=512, head_out=10):
    keys = jax.random.split(key, 10)
    fan_in_conv = in_channels * 9
    conv_w = jax.random.normal(keys[0], (feat_dim, in_channels, 3, 3),
                               jnp.float32) / math.sqrt(fan_in_conv)
    conv_b = jax.random.normal(keys[1], (feat_dim,), jnp.float32) * 0.01

    def linear(kw, kb):
        w = jax.random.normal(kw, (feat_dim, head_out), jnp.float32) / math.sqrt(feat_dim)
        b = jax.random.normal(kb, (head_out,), jnp.float32) * 0.01
        return w, b

    qw, qb = linear(keys[2], keys[3])
    cw, cb = linear(keys[4], keys[5])
    aw, ab = linear(keys[6], keys[7])
    pw, pb = linear(keys[8], keys[9])
    return dict(conv_w=conv_w, conv_b=conv_b,
                quality_w=qw, quality_b=qb, clear_w=cw, clear_b=cb,
                artifact_w=aw, artifact_b=ab, position_w=pw, position_b=pb)


@jax.jit
def experiment_model_forward(x_nchw, params):
    heads_w = jnp.concatenate([params["quality_w"], params["clear_w"],
                               params["artifact_w"], params["position_w"]], axis=1)
    heads_b = jnp.concatenate([params["quality_b"], params["clear_b"],
                               params["artifact_b"], params["position_b"]], axis=0)
    feat, logits = fused_backbone_heads(
        x_nchw, params["conv_w"], params["conv_b"], heads_w, heads_b)
    # Dropout(p=0.5): eval-mode identity.
    # TODO(synk): training-mode dropout would need a pltpu.prng_random_bits mask on feat.
    quality, clear, artifact, position = jnp.split(logits, 4, axis=1)
    return dict(feature=feat, quality=quality, clear=clear,
                artifact=artifact, position=position)


# ---------------------------------------------------------------------------
# Pure-JAX reference (same bf16 operand casts, f32 accumulation) for correctness
# ---------------------------------------------------------------------------
def _reference_forward(x_nchw, params):
    B, Cin, H, W = x_nchw.shape
    HW = H * W
    x = jnp.transpose(x_nchw, (0, 2, 3, 1))
    xp = jnp.pad(x, ((0, 0), (1, 1), (1, 1), (0, 0)))
    taps = jnp.concatenate(
        [xp[:, i:i + H, j:j + W, :] for i in range(3) for j in range(3)], axis=-1)
    patches = taps.reshape(B, HW, 9 * Cin)
    patches = jnp.concatenate([patches, jnp.ones((B, HW, 1), patches.dtype)], axis=-1)
    wmat = jnp.transpose(params["conv_w"], (2, 3, 1, 0)).reshape(9 * Cin, -1)
    wmat = jnp.concatenate([wmat, params["conv_b"][None, :]], axis=0)
    conv = jnp.einsum("bpk,kc->bpc",
                      patches.astype(jnp.bfloat16), wmat.astype(jnp.bfloat16),
                      preferred_element_type=jnp.float32)
    conv = jnp.maximum(conv, 0.0)
    feat = conv.mean(axis=1)
    heads_w = jnp.concatenate([params["quality_w"], params["clear_w"],
                               params["artifact_w"], params["position_w"]], axis=1)
    heads_b = jnp.concatenate([params["quality_b"], params["clear_b"],
                               params["artifact_b"], params["position_b"]], axis=0)
    logits = jnp.dot(feat.astype(jnp.bfloat16), heads_w.astype(jnp.bfloat16),
                     preferred_element_type=jnp.float32) + heads_b[None, :]
    q, c, a, p = jnp.split(logits, 4, axis=1)
    return dict(feature=feat, quality=q, clear=c, artifact=a, position=p)


if __name__ == "__main__":
    key = jax.random.PRNGKey(0)
    kx, kp = jax.random.split(key)
    # Small image batch consistent with an image-classification backbone (NCHW like PyTorch).
    x = jax.random.normal(kx, (2, 3, 16, 16), jnp.float32)
    params = init_params(kp)

    out = experiment_model_forward(x, params)
    jax.block_until_ready(out)

    ref = _reference_forward(x, params)
    for k in ("feature", "quality", "clear", "artifact", "position"):
        assert out[k].shape == ref[k].shape, f"shape mismatch in {k}"
        assert jnp.allclose(out[k], ref[k], atol=1e-3, rtol=1e-3), f"mismatch in {k}"

    print("KERNEL_OK")
</pallas_src>

<mosaic_0001>
module attributes {stable_mosaic.version = 11 : i64} {
  func.func @_fused_conv_gap_heads_kernel(%arg0: i32, %arg1: i32, %arg2: memref<256x28xbf16, #tpu.memory_space<vmem>>, %arg3: memref<28x512xbf16, #tpu.memory_space<vmem>>, %arg4: memref<512x128xbf16, #tpu.memory_space<vmem>>, %arg5: memref<1x128xf32, #tpu.memory_space<vmem>>, %arg6: memref<1x1x512xf32, #tpu.memory_space<vmem>>, %arg7: memref<1x1x128xf32, #tpu.memory_space<vmem>>, %arg8: memref<8x512xf32, #tpu.memory_space<vmem>>) attributes {dimension_semantics = [#tpu.dimension_semantics<parallel>, #tpu.dimension_semantics<arbitrary>], iteration_bounds = array<i64: 2, 1>, scalar_prefetch = 0 : i64, scratch_operands = 1 : i64, tpu.core_type = #tpu.core_type<tc>, window_params = [{transform_indices = @transform_0, window_bounds = array<i64: 256, 28>}, {pipeline_mode = #tpu.pipeline_mode<synchronous>, transform_indices = @transform_1, window_bounds = array<i64: 28, 512>}, {pipeline_mode = #tpu.pipeline_mode<synchronous>, transform_indices = @transform_2, window_bounds = array<i64: 512, 128>}, {pipeline_mode = #tpu.pipeline_mode<synchronous>, transform_indices = @transform_3, window_bounds = array<i64: 1, 128>}, {transform_indices = @transform_4, window_bounds = array<i64: 1, 1, 512>}, {transform_indices = @transform_5, window_bounds = array<i64: 1, 1, 128>}]} {
    %c0_i32 = arith.constant 0 : i32
    %0 = arith.cmpi eq, %arg1, %c0_i32 : i32
    %1 = arith.extui %0 : i1 to i32
    %c0_i32_0 = arith.constant 0 : i32
    %2 = arith.cmpi ne, %1, %c0_i32_0 : i32
    scf.if %2 {
      %cst_12 = arith.constant 0.000000e+00 : f32
      %16 = vector.broadcast %cst_12 : f32 to vector<8x512xf32>
      %c0_13 = arith.constant 0 : index
      %c0_14 = arith.constant 0 : index
      %17 = vector.load %arg8[%c0_13, %c0_14] : memref<8x512xf32, #tpu.memory_space<vmem>>, vector<8x512xf32>
      tpu.vector_store %arg8[%c0_13, %c0_14], %16 {strides = array<i32>} : memref<8x512xf32, #tpu.memory_space<vmem>>, vector<8x512xf32>,
    } else {
    }
    %c0 = arith.constant 0 : index
    %c0_1 = arith.constant 0 : index
    %3 = vector.load %arg2[%c0, %c0_1] : memref<256x28xbf16, #tpu.memory_space<vmem>>, vector<256x28xbf16>
    %c0_2 = arith.constant 0 : index
    %c0_3 = arith.constant 0 : index
    %4 = vector.load %arg3[%c0_2, %c0_3] : memref<28x512xbf16, #tpu.memory_space<vmem>>, vector<28x512xbf16>
    %cst = arith.constant dense<0.000000e+00> : vector<256x512xf32>
    %5 = tpu.matmul %3, %4, %cst {dimension_numbers = #tpu.dot_dimension_numbers<[1], [0], [0], [1], [0, 0, 1, 1], [], []>} : vector<256x28xbf16>, vector<28x512xbf16>, vector<256x512xf32> -> vector<256x512xf32>
    %cst_4 = arith.constant 0.000000e+00 : f32
    %6 = vector.broadcast %cst_4 : f32 to vector<256x512xf32>
    %7 = arith.maximumf %5, %6 : vector<256x512xf32>
    %c0_5 = arith.constant 0 : index
    %c0_6 = arith.constant 0 : index
    %8 = vector.load %arg8[%c0_5, %c0_6] : memref<8x512xf32, #tpu.memory_space<vmem>>, vector<8x512xf32>
    %9 = vector.shape_cast %7 : vector<256x512xf32> to vector<32x8x512xf32>
    %cst_7 = arith.constant dense<0.000000e+00> : vector<8x512xf32>
    %10 = vector.multi_reduction <add>, %9, %cst_7 [0] : vector<32x8x512xf32> to vector<8x512xf32>
    %11 = arith.addf %8, %10 : vector<8x512xf32>
    %c0_8 = arith.constant 0 : index
    %c0_9 = arith.constant 0 : index
    %12 = vector.load %arg8[%c0_8, %c0_9] : memref<8x512xf32, #tpu.memory_space<vmem>>, vector<8x512xf32>
    tpu.vector_store %arg8[%c0_8, %c0_9], %11 {strides = array<i32>} : memref<8x512xf32, #tpu.memory_space<vmem>>, vector<8x512xf32>,
    %c0_i32_10 = arith.constant 0 : i32
    %13 = arith.cmpi eq, %arg1, %c0_i32_10 : i32
    %14 = arith.extui %13 : i1 to i32
    %c0_i32_11 = arith.constant 0 : i32
    %15 = arith.cmpi ne, %14, %c0_i32_11 : i32
    scf.if %15 {
      %c0_12 = arith.constant 0 : index
      %c0_13 = arith.constant 0 : index
      %16 = vector.load %arg8[%c0_12, %c0_13] : memref<8x512xf32, #tpu.memory_space<vmem>>, vector<8x512xf32>
      %cst_14 = arith.constant dense<0.000000e+00> : vector<512xf32>
      %17 = vector.multi_reduction <add>, %16, %cst_14 [0] : vector<8x512xf32> to vector<512xf32>
      %18 = vector.shape_cast %17 : vector<512xf32> to vector<1x512xf32>
      %cst_15 = arith.constant 3.906250e-03 : f32
      %19 = vector.broadcast %cst_15 : f32 to vector<1x512xf32>
      %20 = arith.mulf %18, %19 : vector<1x512xf32>
      %c0_16 = arith.constant 0 : index
      %c0_17 = arith.constant 0 : index
      %c0_18 = arith.constant 0 : index
      %21 = vector.load %arg6[%c0_16, %c0_17, %c0_18] : memref<1x1x512xf32, #tpu.memory_space<vmem>>, vector<1x1x512xf32>
      %22 = vector.shape_cast %21 : vector<1x1x512xf32> to vector<1x512xf32>
      %23 = vector.shape_cast %20 : vector<1x512xf32> to vector<1x1x512xf32>
      tpu.vector_store %arg6[%c0_16, %c0_17, %c0_18], %23 {strides = array<i32>} : memref<1x1x512xf32, #tpu.memory_space<vmem>>, vector<1x1x512xf32>,
      %24 = arith.truncf %20 : vector<1x512xf32> to vector<1x512xbf16>
      %c0_19 = arith.constant 0 : index
      %c0_20 = arith.constant 0 : index
      %25 = vector.load %arg4[%c0_19, %c0_20] : memref<512x128xbf16, #tpu.memory_space<vmem>>, vector<512x128xbf16>
      %cst_21 = arith.constant dense<0.000000e+00> : vector<1x128xf32>
      %26 = tpu.matmul %24, %25, %cst_21 {dimension_numbers = #tpu.dot_dimension_numbers<[1], [0], [0], [1], [0, 0, 1, 1], [], []>} : vector<1x512xbf16>, vector<512x128xbf16>, vector<1x128xf32> -> vector<1x128xf32>
      %c0_22 = arith.constant 0 : index
      %c0_23 = arith.constant 0 : index
      %27 = vector.load %arg5[%c0_22, %c0_23] : memref<1x128xf32, #tpu.memory_space<vmem>>, vector<1x128xf32>
      %28 = arith.addf %26, %27 : vector<1x128xf32>
      %c0_24 = arith.constant 0 : index
      %c0_25 = arith.constant 0 : index
      %c0_26 = arith.constant 0 : index
      %29 = vector.load %arg7[%c0_24, %c0_25, %c0_26] : memref<1x1x128xf32, #tpu.memory_space<vmem>>, vector<1x1x128xf32>
      %30 = vector.shape_cast %29 : vector<1x1x128xf32> to vector<1x128xf32>
      %31 = vector.shape_cast %28 : vector<1x128xf32> to vector<1x1x128xf32>
      tpu.vector_store %arg7[%c0_24, %c0_25, %c0_26], %31 {strides = array<i32>} : memref<1x1x128xf32, #tpu.memory_space<vmem>>, vector<1x1x128xf32>,
    } else {
    }
    return
  }
  func.func @transform_0(%arg0: i32, %arg1: i32) -> (i32, i32) {
    %c1_i32 = arith.constant 1 : i32
    %0 = arith.muli %arg0, %c1_i32 : i32
    %1 = arith.addi %0, %arg1 : i32
    %c0_i32 = arith.constant 0 : i32
    %c0_i32_0 = arith.constant 0 : i32
    return %1, %c0_i32 : i32, i32
  }
  func.func @transform_1(%arg0: i32, %arg1: i32) -> (i32, i32) {
    %c0_i32 = arith.constant 0 : i32
    %c0_i32_0 = arith.constant 0 : i32
    %c0_i32_1 = arith.constant 0 : i32
    return %c0_i32, %c0_i32_0 : i32, i32
  }
  func.func @transform_2(%arg0: i32, %arg1: i32) -> (i32, i32) {
    %c0_i32 = arith.constant 0 : i32
    %c0_i32_0 = arith.constant 0 : i32
    %c0_i32_1 = arith.constant 0 : i32
    return %c0_i32, %c0_i32_0 : i32, i32
  }
  func.func @transform_3(%arg0: i32, %arg1: i32) -> (i32, i32) {
    %c0_i32 = arith.constant 0 : i32
    %c0_i32_0 = arith.constant 0 : i32
    %c0_i32_1 = arith.constant 0 : i32
    return %c0_i32, %c0_i32_0 : i32, i32
  }
  func.func @transform_4(%arg0: i32, %arg1: i32) -> (i32, i32, i32) {
    %c0_i32 = arith.constant 0 : i32
    %c0_i32_0 = arith.constant 0 : i32
    %c0_i32_1 = arith.constant 0 : i32
    return %arg0, %c0_i32, %c0_i32_0 : i32, i32, i32
  }
  func.func @transform_5(%arg0: i32, %arg1: i32) -> (i32, i32, i32) {
    %c0_i32 = arith.constant 0 : i32
    %c0_i32_0 = arith.constant 0 : i32
    %c0_i32_1 = arith.constant 0 : i32
    return %arg0, %c0_i32, %c0_i32_0 : i32, i32, i32
  }
}

</mosaic_0001>

<bundles_post_ra>
// kernel: experiment_model_forward.1
= control target key start
LH: loop header
LB: loop body
LE: loop exit
PB: predicated region body
PF: predicated region fallthrough
CT: control target
= control target key end

     0   :  { %s1913_s18 = smov 0   ;;  %s1915_s19 = smov 0   ;;  %s2167_s0 = inlined_call_operand.vmem [shape: bf16[512,28], index: 0, kind: input, shape index: {}]   ;;  %s2168_s1 = inlined_call_operand.vmem [shape: bf16[28,512], index: 1, kind: input, shape index: {}]   ;;  %s2169_s2 = inlined_call_operand.vmem [shape: bf16[512,128], index: 2, kind: input, shape index: {}]   ;;  %s2170_s3 = inlined_call_operand.vmem [shape: f32[1,128], index: 3, kind: input, shape index: {}]   ;;  %s2171_s4 = inlined_call_operand.vmem [shape: f32[2,1,512], index: 4, kind: output, shape index: {0}]   ;;  %s2172_s5 = inlined_call_operand.vmem [shape: f32[2,1,128], index: 5, kind: output, shape index: {1}]  }
   0x1   :  { %s1917_s20 = smov 0  }
   0x2 LB: > { %s28_s21 = sadd.s32 1, %s1875_s19  ;;  %p1631_p0 = scmp.ge.s32.totalorder %s1879_s20, 1  ;;  %s1879_s20 = sphi %s1917_s20, %s16_s20   ;;  %s1875_s19 = sphi %s1915_s19, %s2174_s19   ;;  %s1871_s18 = sphi %s1913_s18, %s2173_s18  }
   0x3   : > { %p30_p1 = scmp.ge.s32.totalorder %s28_s21, 2  ;;  %p207_p2 = scmp.lt.s32.totalorder %s1879_s20, 3 }
   0x5   : > { %s2176_s21 = smov (%p30_p1, %s28_s21), 0  ;;  %p208_p3 = pnand %p1631_p0, %p207_p2 }
   0x6   : > { %v1797_v0 = vld [vmem:[%s2168_s1 + $0x4] ss:$16 sps:$4 sm:$0xff] (!%p208_p3)   ;;  %v1799_v1 = vld [vmem:[%s2168_s1 + $0xc] ss:$16 sps:$4 sm:$0xff] (!%p208_p3)   ;;  %vm467_vm0 = vcmask (!%p208_p3), 1045504   ;;  %v1881_v2 = vmov (!%p208_p3), 0  }
   0x7   : > { %211 = sbr.rel (%p208_p3) target bundleno = 594 (0x252), region = 36  ;;  %512 = vmatprep.mubr.bf16.mxu0 (!%p208_p3), %v1881_v2  ;;  %705 = vmatprep.mubr.bf16.mxu1 (!%p208_p3), %v1881_v2  ;;  %s1632_s26 = sshll.u32 (!%p208_p3), %s1871_s18, 5  ;;  %v1801_v3 = vld [vmem:[%s2168_s1] ss:$16 sps:$4 sm:$0xff] (!%p208_p3)   ;;  %v1802_v4 = vld [vmem:[%s2168_s1 + $0x8] ss:$16 sps:$4 sm:$0xff] (!%p208_p3)  }
   0x8   : > { %480 = vmatprep.subr.bf16.mxu0 (!%p208_p3), %v1797_v0  ;;  %p240_p4 = scmp.lt.s32.totalorder (!%p208_p3), %s1632_s26, 63  ;;  %673 = vmatprep.subr.bf16.mxu1 (!%p208_p3), %v1799_v1  ;;  %v1803_v5 = vld [vmem:[%s2168_s1 + $0x24] ss:$16 sps:$4 sm:$0x3f] (!%p208_p3)   ;;  %vm418_vm1 = vcmask (!%p208_p3), 228352   ;;  %v1829_v31 = vld [vmem:[%s2169_s2 + $0x48] sm:$0xff] (!%p208_p3)  }
   0x9   : > { %481 = vmatpush1.bf16.msra.mxu0 (!%p208_p3), %v1801_v3  ;;  %674 = vmatpush1.bf16.msra.mxu1 (!%p208_p3), %v1802_v4  ;;  %v1805_v6 = vld [vmem:[%s2168_s1 + $0x2c] ss:$16 sps:$4 sm:$0x3f] (!%p208_p3)   ;;  %v1807_v7 = vld [vmem:[%s2168_s1 + $0x20] ss:$16 sps:$4 sm:$0x3f] (!%p208_p3)  }
   0xa   : > { %1659 = vmatprep.subr.msk.bf16.mxu0 (!%p208_p3), %vm467_vm0, %v1803_v5  ;;  %v1808_v8 = vld [vmem:[%s2168_s1 + $0x28] ss:$16 sps:$4 sm:$0x3f] (!%p208_p3)   ;;  %1676 = vmatprep.subr.msk.bf16.mxu1 (!%p208_p3), %vm467_vm0, %v1805_v6  ;;  %v469_v9 = vsel (!%p208_p3), %vm467_vm0, %v1807_v7, 0  ;;  %v1825_v25 = vld [vmem:[%s2169_s2 + $0x40] sm:$0xff] (!%p208_p3)   ;;  %v1833_v35 = vld [vmem:[%s2169_s2 + $0x50] sm:$0xff] (!%p208_p3)  }
   0xb   : > { %v475_v10 = vsel (!%p208_p3), %vm467_vm0, %v1808_v8, 0  ;;  %v1826_v26 = vld [vmem:[%s2169_s2] sm:$0xff] (!%p208_p3)   ;;  %v1830_v32 = vld [vmem:[%s2169_s2 + $0x8] sm:$0xff] (!%p208_p3)   ;;  %v1834_v36 = vld [vmem:[%s2169_s2 + $0x10] sm:$0xff] (!%p208_p3)   ;;  %p246_p5 = scmp.lt.s32.totalorder (!%p208_p3), %s1871_s18, 1 }
   0xc   : > { %v1827_v27 = vld [vmem:[%s2169_s2 + $0xc0] sm:$0xff] (!%p208_p3)   ;;  %v1831_v33 = vld [vmem:[%s2169_s2 + $0xc8] sm:$0xff] (!%p208_p3)   ;;  %v1835_v37 = vld [vmem:[%s2169_s2 + $0xd0] sm:$0xff] (!%p208_p3)  }
   0xd   : > { %483 = vmatpush1.bf16.msra.mxu0 (!%p208_p3), %v469_v9  ;;  %676 = vmatpush1.bf16.msra.mxu1 (!%p208_p3), %v475_v10  ;;  %v1828_v28 = vld [vmem:[%s2169_s2 + $0x80] sm:$0xff] (!%p208_p3)   ;;  %v1832_v34 = vld [vmem:[%s2169_s2 + $0x88] sm:$0xff] (!%p208_p3)   ;;  %v1836_v38 = vld [vmem:[%s2169_s2 + $0x90] sm:$0xff] (!%p208_p3)  }
   0xe   : > { %s2178_s26 = smov (!%p240_p4, %s1632_s26), 63  ;;  %1727 = vmatprep.subr.bf16.mxu0 %v1825_v25  ;;  %1749 = vmatprep.subr.bf16.mxu1 %v1827_v27  ;;  %v1837_v39 = vld [vmem:[%s2169_s2 + $0x58] sm:$0xff]   ;;  %v1841_v43 = vld [vmem:[%s2169_s2 + $0x60] sm:$0xff]   ;;  %v1845_v47 = vld [vmem:[%s2169_s2 + $0x68] sm:$0xff]   ;;  %s2180_s18 = smov (!%p246_p5, %s1871_s18), 1 }
   0xf   : > { %s1633_s14 = sshll.u32 %s2178_s26, 2  ;;  %v1838_v40 = vld [vmem:[%s2169_s2 + $0x18] sm:$0xff]   ;;  %v1842_v44 = vld [vmem:[%s2169_s2 + $0x20] sm:$0xff]   ;;  %v1846_v48 = vld [vmem:[%s2169_s2 + $0x28] sm:$0xff]   ;;  %s1634_s23 = sshll.u32 %s2180_s18, 2 }
  0x10   : > { %s1967_s17 = scalar_lea.vmem %s2167_s0, %s1633_s14  ;;  %v1839_v41 = vld [vmem:[%s2169_s2 + $0xd8] sm:$0xff]   ;;  %v1843_v45 = vld [vmem:[%s2169_s2 + $0xe0] sm:$0xff]   ;;  %v1847_v49 = vld [vmem:[%s2169_s2 + $0xe8] sm:$0xff]   ;;  %s249_s26 = scalar_lea.vmem %s2171_s4, %s1634_s23 }
  0x11   : > { %v1809_v11 = vld [vmem:[%s1967_s17] sm:$0xff]   ;;  %v1810_v12 = vld [vmem:[%s1967_s17 + $0x8] sm:$0xff]   ;;  %v1811_v13 = vld [vmem:[%s1967_s17 + $0x10] sm:$0xff]   ;;  %s252_s6 = scalar_lea.vmem %s2172_s5, %s2180_s18 }
  0x12   : > { %1660 = vmatmul.mubr.msk.bf16.vlgmr.msra.gmra.mrb[0].mxu0 %vm418_vm1, %v1809_v11  ;;  %1677 = vmatmul.mubr.msk.bf16.vlgmr.msra.gmra.mrb[0].mxu1 %vm418_vm1, %v1809_v11  ;;  %v1812_v14 = vld [vmem:[%s1967_s17 + $0x18] sm:$0xff]   ;;  %v1813_v15 = vld [vmem:[%s1967_s17 + $0x20] sm:$0xff]   ;;  %v1814_v16 = vld [vmem:[%s1967_s17 + $0x28] sm:$0xff]  }
  0x13   : > { %522 = vmatprep.mubr.bf16.mxu0 %v1881_v2  ;;  %715 = vmatprep.mubr.bf16.mxu1 %v1881_v2  ;;  %v1815_v17 = vld [vmem:[%s1967_s17 + $0x30] sm:$0xff]   ;;  %v1816_v18 = vld [vmem:[%s1967_s17 + $0x38] sm:$0xff]   ;;  %v1817_v19 = vld [vmem:[%s1967_s17 + $0x40] sm:$0xff]  }
  0x14   : > { %v1818_v20 = vld [vmem:[%s1967_s17 + $0x48] sm:$0xff]   ;;  %v1819_v21 = vld [vmem:[%s1967_s17 + $0x50] sm:$0xff]   ;;  %v1820_v22 = vld [vmem:[%s1967_s17 + $0x58] sm:$0xff]   ;;  %1728 = vmatpush3.bf16.msra.mxu0 %v1826_v26  ;;  %1750 = vmatpush3.bf16.msra.mxu1 %v1828_v28 }
  0x15   : > { %v1821_v23 = vld [vmem:[%s1967_s17 + $0x60] sm:$0xff]   ;;  %v1822_v24 = vld [vmem:[%s1967_s17 + $0x68] sm:$0xff]   ;;  %v1823_v29 = vld [vmem:[%s1967_s17 + $0x70] sm:$0xff]   ;;  %1729 = vmatprep.subr.bf16.mxu0 %v1829_v31  ;;  %1751 = vmatprep.subr.bf16.mxu1 %v1831_v33 }
  0x16   : > { %v1824_v30 = vld [vmem:[%s1967_s17 + $0x78] sm:$0xff]   ;;  %v1844_v46 = vld [vmem:[%s2169_s2 + $0xa0] sm:$0xff]   ;;  %v1848_v50 = vld [vmem:[%s2169_s2 + $0xa8] sm:$0xff]  }
  0x17   : > { %v1840_v42 = vld [vmem:[%s2169_s2 + $0x98] sm:$0xff]   ;;  %v1849_v51 = vld [vmem:[%s2169_s2 + $0x70] sm:$0xff]  }
  0x18   : > { %1730 = vmatpush3.bf16.msra.mxu0 %v1830_v32  ;;  %1752 = vmatpush3.bf16.msra.mxu1 %v1832_v34  ;;  %v1850_v52 = vld [vmem:[%s2169_s2 + $0x30] sm:$0xff]   ;;  %v1853_v27 = vld [vmem:[%s2169_s2 + $0x78] sm:$0xff]  }
  0x19   : > { %1731 = vmatprep.subr.bf16.mxu0 %v1833_v35  ;;  %1753 = vmatprep.subr.bf16.mxu1 %v1835_v37  ;;  %v1851_v53 = vld [vmem:[%s2169_s2 + $0xf0] sm:$0xff]   ;;  %v1855_v28 = vld [vmem:[%s2169_s2 + $0xf8] sm:$0xff]  }
  0x1a   : > { %1661 = vmatmul.mubr.msk.bf16.gmra.mrb[4].mxu0 %vm418_vm1, %v1810_v12  ;;  %1678 = vmatmul.mubr.msk.bf16.gmra.mrb[4].mxu1 %vm418_vm1, %v1810_v12  ;;  %v1852_v54 = vld [vmem:[%s2169_s2 + $0xb0] sm:$0xff]   ;;  %v1854_v33 = vld [vmem:[%s2169_s2 + $0x38] sm:$0xff]  }
  0x1b   : > { %532 = vmatprep.mubr.bf16.mxu0 %v1881_v2  ;;  %725 = vmatprep.mubr.bf16.mxu1 %v1881_v2  ;;  %v1856_v34 = vld [vmem:[%s2169_s2 + $0xb8] sm:$0xff]  }
  0x1c   : > { %1732 = vmatpush3.bf16.msra.mxu0 %v1834_v36  ;;  %1754 = vmatpush3.bf16.msra.mxu1 %v1836_v38 }
  0x1d   : > { %1733 = vmatprep.subr.bf16.mxu0 %v1837_v39  ;;  %1755 = vmatprep.subr.bf16.mxu1 %v1839_v41 }
  0x20   : > { %1734 = vmatpush3.bf16.msra.mxu0 %v1838_v40  ;;  %1756 = vmatpush3.bf16.msra.mxu1 %v1840_v42 }
  0x21   : > { %1735 = vmatprep.subr.bf16.mxu0 %v1841_v43  ;;  %1757 = vmatprep.subr.bf16.mxu1 %v1843_v45 }
  0x22   : > { %1662 = vmatmul.mubr.msk.bf16.gmra.mrb[8].mxu0 %vm418_vm1, %v1811_v13  ;;  %1679 = vmatmul.mubr.msk.bf16.gmra.mrb[8].mxu1 %vm418_vm1, %v1811_v13 }
  0x23   : > { %542 = vmatprep.mubr.bf16.mxu0 %v1881_v2  ;;  %735 = vmatprep.mubr.bf16.mxu1 %v1881_v2 }
  0x24   : > { %1736 = vmatpush3.bf16.msra.mxu0 %v1842_v44  ;;  %1758 = vmatpush3.bf16.msra.mxu1 %v1844_v46 }
  0x25   : > { %1737 = vmatprep.subr.bf16.mxu0 %v1845_v47  ;;  %1759 = vmatprep.subr.bf16.mxu1 %v1847_v49 }
  0x28   : > { %1738 = vmatpush3.bf16.msra.mxu0 %v1846_v48  ;;  %1760 = vmatpush3.bf16.msra.mxu1 %v1848_v50 }
  0x29   : > { %1739 = vmatprep.subr.bf16.mxu0 %v1849_v51  ;;  %1761 = vmatprep.subr.bf16.mxu1 %v1851_v53 }
  0x2a   : > { %1663 = vmatmul.mubr.msk.bf16.gmra.mrb[12].mxu0 %vm418_vm1, %v1812_v14  ;;  %1680 = vmatmul.mubr.msk.bf16.gmra.mrb[12].mxu1 %vm418_vm1, %v1812_v14 }
  0x2b   : > { %552 = vmatprep.mubr.bf16.mxu0 %v1881_v2  ;;  %745 = vmatprep.mubr.bf16.mxu1 %v1881_v2 }
  0x2c   : > { %1740 = vmatpush3.bf16.msra.mxu0 %v1850_v52  ;;  %1762 = vmatpush3.bf16.msra.mxu1 %v1852_v54 }
  0x2d   : > { %1741 = vmatprep.subr.bf16.mxu0 %v1853_v27  ;;  %1763 = vmatprep.subr.bf16.mxu1 %v1855_v28 }
  0x30   : > { %1742 = vmatpush3.bf16.msra.mxu0 %v1854_v33  ;;  %1764 = vmatpush3.bf16.msra.mxu1 %v1856_v34 }
  0x32   : > { %1664 = vmatmul.mubr.msk.bf16.gmra.mrb[16].mxu0 %vm418_vm1, %v1813_v15  ;;  %1681 = vmatmul.mubr.msk.bf16.gmra.mrb[16].mxu1 %vm418_vm1, %v1813_v15 }
  0x33   : > { %562 = vmatprep.mubr.bf16.mxu0 %v1881_v2  ;;  %755 = vmatprep.mubr.bf16.mxu1 %v1881_v2 }
  0x3a   : > { %1665 = vmatmul.mubr.msk.bf16.gmra.mrb[20].mxu0 %vm418_vm1, %v1814_v16  ;;  %1682 = vmatmul.mubr.msk.bf16.gmra.mrb[20].mxu1 %vm418_vm1, %v1814_v16 }
  0x3b   : > { %572 = vmatprep.mubr.bf16.mxu0 %v1881_v2  ;;  %765 = vmatprep.mubr.bf16.mxu1 %v1881_v2 }
  0x42   : > { %1666 = vmatmul.mubr.msk.bf16.gmra.mrb[24].mxu0 %vm418_vm1, %v1815_v17  ;;  %1683 = vmatmul.mubr.msk.bf16.gmra.mrb[24].mxu1 %vm418_vm1, %v1815_v17 }
  0x43   : > { %582 = vmatprep.mubr.bf16.mxu0 %v1881_v2  ;;  %775 = vmatprep.mubr.bf16.mxu1 %v1881_v2 }
  0x4a   : > { %1667 = vmatmul.mubr.msk.bf16.gmra.mrb[28].mxu0 %vm418_vm1, %v1816_v18  ;;  %1684 = vmatmul.mubr.msk.bf16.gmra.mrb[28].mxu1 %vm418_vm1, %v1816_v18 }
  0x4b   : > { %592 = vmatprep.mubr.bf16.mxu0 %v1881_v2  ;;  %785 = vmatprep.mubr.bf16.mxu1 %v1881_v2 }
  0x52   : > { %1668 = vmatmul.mubr.msk.bf16.gmra.mrb[32].mxu0 %vm418_vm1, %v1817_v19  ;;  %1685 = vmatmul.mubr.msk.bf16.gmra.mrb[32].mxu1 %vm418_vm1, %v1817_v19 }
  0x53   : > { %602 = vmatprep.mubr.bf16.mxu0 %v1881_v2  ;;  %795 = vmatprep.mubr.bf16.mxu1 %v1881_v2 }
  0x5a   : > { %1669 = vmatmul.mubr.msk.bf16.gmra.mrb[36].mxu0 %vm418_vm1, %v1818_v20  ;;  %1686 = vmatmul.mubr.msk.bf16.gmra.mrb[36].mxu1 %vm418_vm1, %v1818_v20 }
  0x5b   : > { %612 = vmatprep.mubr.bf16.mxu0 %v1881_v2  ;;  %805 = vmatprep.mubr.bf16.mxu1 %v1881_v2 }
  0x62   : > { %1670 = vmatmul.mubr.msk.bf16.gmra.mrb[40].mxu0 %vm418_vm1, %v1819_v21  ;;  %1687 = vmatmul.mubr.msk.bf16.gmra.mrb[40].mxu1 %vm418_vm1, %v1819_v21 }
  0x63   : > { %622 = vmatprep.mubr.bf16.mxu0 %v1881_v2  ;;  %815 = vmatprep.mubr.bf16.mxu1 %v1881_v2 }
  0x6a   : > { %1671 = vmatmul.mubr.msk.bf16.gmra.mrb[44].mxu0 %vm418_vm1, %v1820_v22  ;;  %1688 = vmatmul.mubr.msk.bf16.gmra.mrb[44].mxu1 %vm418_vm1, %v1820_v22 }
  0x6b   : > { %632 = vmatprep.mubr.bf16.mxu0 %v1881_v2  ;;  %825 = vmatprep.mubr.bf16.mxu1 %v1881_v2 }
  0x72   : > { %1672 = vmatmul.mubr.msk.bf16.gmra.mrb[48].mxu0 %vm418_vm1, %v1821_v23  ;;  %1689 = vmatmul.mubr.msk.bf16.gmra.mrb[48].mxu1 %vm418_vm1, %v1821_v23 }
  0x73   : > { %642 = vmatprep.mubr.bf16.mxu0 %v1881_v2  ;;  %835 = vmatprep.mubr.bf16.mxu1 %v1881_v2 }
  0x7a   : > { %1673 = vmatmul.mubr.msk.bf16.gmra.mrb[52].mxu0 %vm418_vm1, %v1822_v24  ;;  %1690 = vmatmul.mubr.msk.bf16.gmra.mrb[52].mxu1 %vm418_vm1, %v1822_v24 }
  0x7b   : > { %652 = vmatprep.mubr.bf16.mxu0 %v1881_v2  ;;  %845 = vmatprep.mubr.bf16.mxu1 %v1881_v2 }
  0x82   : > { %1674 = vmatmul.mubr.msk.bf16.gmra.mrb[56].mxu0 %vm418_vm1, %v1823_v29  ;;  %1691 = vmatmul.mubr.msk.bf16.gmra.mrb[56].mxu1 %vm418_vm1, %v1823_v29 }
  0x83   : > { %662 = vmatprep.mubr.bf16.mxu0 %v1881_v2  ;;  %855 = vmatprep.mubr.bf16.mxu1 %v1881_v2 }
  0x8a   : > { %1675 = vmatmul.mubr.msk.bf16.gmra.mrb[60].mxu0 %vm418_vm1, %v1824_v30  ;;  %1692 = vmatmul.mubr.msk.bf16.gmra.mrb[60].mxu1 %vm418_vm1, %v1824_v30 }
  0xe5   : > { %v514_v55 = vpop.f32.mrb[0].mxu0  ;;  %v707_v56 = vpop.f32.mrb[0].mxu1 }
  0xe6   : > { %v868_v57 = vmax.f32 %v707_v56, 0.0  ;;  %v516_v58 = vpop.f32.mrb[1].mxu0  ;;  %v709_v59 = vpop.f32.mrb[1].mxu1  ;;  %v866_v63 = vmax.f32 %v514_v55, 0.0 }
  0xe7   : > { %v869_v60 = vmax.f32 %v709_v59, 0.0  ;;  %v518_v61 = vpop.f32.mrb[2].mxu0  ;;  %v711_v62 = vpop.f32.mrb[2].mxu1  ;;  %v867_v4 = vmax.f32 %v516_v58, 0.0 }
  0xe8   : > { %v870_v0 = vmax.f32 %v518_v61, 0.0  ;;  %v872_v1 = vmax.f32 %v711_v62, 0.0  ;;  %v520_v2 = vpop.f32.mrb[3].mxu0  ;;  %v713_v3 = vpop.f32.mrb[3].mxu1 }
  0xe9   : > { %v871_v5 = vmax.f32 %v520_v2, 0.0  ;;  %v873_v6 = vmax.f32 %v713_v3, 0.0 }
  0xea   : > { %v998_v7 = vadd.f32 %v870_v0, %v866_v63  ;;  %v1060_v8 = vadd.f32 %v872_v1, %v868_v57 }
  0xeb   : > { %v1029_v9 = vadd.f32 %v871_v5, %v867_v4  ;;  %v1091_v10 = vadd.f32 %v873_v6, %v869_v60 }
  0xed   : > { %v524_v11 = vpop.f32.mrb[4].mxu0  ;;  %v717_v12 = vpop.f32.mrb[4].mxu1 }
  0xee   : > { %v874_v13 = vmax.f32 %v524_v11, 0.0  ;;  %v876_v14 = vmax.f32 %v717_v12, 0.0  ;;  %v526_v15 = vpop.f32.mrb[5].mxu0  ;;  %v719_v16 = vpop.f32.mrb[5].mxu1 }
  0xef   : > { %v875_v17 = vmax.f32 %v526_v15, 0.0  ;;  %v877_v18 = vmax.f32 %v719_v16, 0.0  ;;  %v528_v19 = vpop.f32.mrb[6].mxu0  ;;  %v721_v20 = vpop.f32.mrb[6].mxu1 }
  0xf0   : > { %v999_v21 = vadd.f32 %v998_v7, %v874_v13  ;;  %v1061_v22 = vadd.f32 %v1060_v8, %v876_v14  ;;  %v878_v23 = vmax.f32 %v528_v19, 0.0  ;;  %v880_v24 = vmax.f32 %v721_v20, 0.0  ;;  %v530_v25 = vpop.f32.mrb[7].mxu0  ;;  %v723_v26 = vpop.f32.mrb[7].mxu1 }
  0xf1   : > { %v1030_v29 = vadd.f32 %v1029_v9, %v875_v17  ;;  %v1092_v30 = vadd.f32 %v1091_v10, %v877_v18  ;;  %v879_v31 = vmax.f32 %v530_v25, 0.0  ;;  %v881_v32 = vmax.f32 %v723_v26, 0.0 }
  0xf2   : > { %v1000_v35 = vadd.f32 %v999_v21, %v878_v23  ;;  %v1062_v36 = vadd.f32 %v1061_v22, %v880_v24 }
  0xf3   : > { %v1031_v37 = vadd.f32 %v1030_v29, %v879_v31  ;;  %v1093_v38 = vadd.f32 %v1092_v30, %v881_v32 }
  0xf5   : > { %v534_v39 = vpop.f32.mrb[8].mxu0  ;;  %v727_v40 = vpop.f32.mrb[8].mxu1 }
  0xf6   : > { %v882_v41 = vmax.f32 %v534_v39, 0.0  ;;  %v884_v42 = vmax.f32 %v727_v40, 0.0  ;;  %v536_v43 = vpop.f32.mrb[9].mxu0  ;;  %v729_v44 = vpop.f32.mrb[9].mxu1 }
  0xf7   : > { %v883_v45 = vmax.f32 %v536_v43, 0.0  ;;  %v885_v46 = vmax.f32 %v729_v44, 0.0  ;;  %v538_v47 = vpop.f32.mrb[10].mxu0  ;;  %v731_v48 = vpop.f32.mrb[10].mxu1 }
  0xf8   : > { %v1001_v49 = vadd.f32 %v1000_v35, %v882_v41  ;;  %v1063_v50 = vadd.f32 %v1062_v36, %v884_v42  ;;  %v886_v51 = vmax.f32 %v538_v47, 0.0  ;;  %v888_v52 = vmax.f32 %v731_v48, 0.0  ;;  %v540_v53 = vpop.f32.mrb[11].mxu0  ;;  %v733_v54 = vpop.f32.mrb[11].mxu1 }
  0xf9   : > { %v1032_v55 = vadd.f32 %v1031_v37, %v883_v45  ;;  %v1094_v56 = vadd.f32 %v1093_v38, %v885_v46  ;;  %v887_v57 = vmax.f32 %v540_v53, 0.0  ;;  %v889_v58 = vmax.f32 %v733_v54, 0.0 }
  0xfa   : > { %v1002_v59 = vadd.f32 %v1001_v49, %v886_v51  ;;  %v1064_v60 = vadd.f32 %v1063_v50, %v888_v52 }
  0xfb   : > { %v1033_v61 = vadd.f32 %v1032_v55, %v887_v57  ;;  %v1095_v62 = vadd.f32 %v1094_v56, %v889_v58 }
  0xfd   : > { %v544_v63 = vpop.f32.mrb[12].mxu0  ;;  %v737_v0 = vpop.f32.mrb[12].mxu1 }
  0xfe   : > { %v890_v1 = vmax.f32 %v544_v63, 0.0  ;;  %v892_v2 = vmax.f32 %v737_v0, 0.0  ;;  %v546_v3 = vpop.f32.mrb[13].mxu0  ;;  %v739_v4 = vpop.f32.mrb[13].mxu1 }
  0xff   : > { %v891_v5 = vmax.f32 %v546_v3, 0.0  ;;  %v893_v6 = vmax.f32 %v739_v4, 0.0  ;;  %v548_v7 = vpop.f32.mrb[14].mxu0  ;;  %v741_v8 = vpop.f32.mrb[14].mxu1 }
 0x100   : > { %v1003_v9 = vadd.f32 %v1002_v59, %v890_v1  ;;  %v1065_v10 = vadd.f32 %v1064_v60, %v892_v2  ;;  %v894_v11 = vmax.f32 %v548_v7, 0.0  ;;  %v896_v12 = vmax.f32 %v741_v8, 0.0  ;;  %v550_v13 = vpop.f32.mrb[15].mxu0  ;;  %v743_v14 = vpop.f32.mrb[15].mxu1 }
 0x101   : > { %v1034_v15 = vadd.f32 %v1033_v61, %v891_v5  ;;  %v1096_v16 = vadd.f32 %v1095_v62, %v893_v6  ;;  %v895_v17 = vmax.f32 %v550_v13, 0.0  ;;  %v897_v18 = vmax.f32 %v743_v14, 0.0 }
 0x102   : > { %v1004_v19 = vadd.f32 %v1003_v9, %v894_v11  ;;  %v1066_v20 = vadd.f32 %v1065_v10, %v896_v12 }
 0x103   : > { %v1035_v21 = vadd.f32 %v1034_v15, %v895_v17  ;;  %v1097_v22 = vadd.f32 %v1096_v16, %v897_v18 }
 0x105   : > { %v554_v23 = vpop.f32.mrb[16].mxu0  ;;  %v747_v24 = vpop.f32.mrb[16].mxu1 }
 0x106   : > { %v898_v25 = vmax.f32 %v554_v23, 0.0  ;;  %v900_v26 = vmax.f32 %v747_v24, 0.0  ;;  %v556_v27 = vpop.f32.mrb[17].mxu0  ;;  %v749_v28 = vpop.f32.mrb[17].mxu1 }
 0x107   : > { %v899_v29 = vmax.f32 %v556_v27, 0.0  ;;  %v901_v30 = vmax.f32 %v749_v28, 0.0  ;;  %v558_v31 = vpop.f32.mrb[18].mxu0  ;;  %v751_v32 = vpop.f32.mrb[18].mxu1 }
 0x108   : > { %v1005_v33 = vadd.f32 %v1004_v19, %v898_v25  ;;  %v1067_v34 = vadd.f32 %v1066_v20, %v900_v26  ;;  %v902_v35 = vmax.f32 %v558_v31, 0.0  ;;  %v904_v36 = vmax.f32 %v751_v32, 0.0  ;;  %v560_v37 = vpop.f32.mrb[19].mxu0  ;;  %v753_v38 = vpop.f32.mrb[19].mxu1 }
 0x109   : > { %v1036_v39 = vadd.f32 %v1035_v21, %v899_v29  ;;  %v1098_v40 = vadd.f32 %v1097_v22, %v901_v30  ;;  %v903_v41 = vmax.f32 %v560_v37, 0.0  ;;  %v905_v42 = vmax.f32 %v753_v38, 0.0 }
 0x10a   : > { %v1006_v43 = vadd.f32 %v1005_v33, %v902_v35  ;;  %v1068_v44 = vadd.f32 %v1067_v34, %v904_v36 }
 0x10b   : > { %v1037_v45 = vadd.f32 %v1036_v39, %v903_v41  ;;  %v1099_v46 = vadd.f32 %v1098_v40, %v905_v42 }
 0x10d   : > { %v564_v47 = vpop.f32.mrb[20].mxu0  ;;  %v757_v48 = vpop.f32.mrb[20].mxu1 }
 0x10e   : > { %v906_v49 = vmax.f32 %v564_v47, 0.0  ;;  %v908_v50 = vmax.f32 %v757_v48, 0.0  ;;  %v566_v51 = vpop.f32.mrb[21].mxu0  ;;  %v759_v52 = vpop.f32.mrb[21].mxu1 }
 0x10f   : > { %v907_v53 = vmax.f32 %v566_v51, 0.0  ;;  %v909_v54 = vmax.f32 %v759_v52, 0.0  ;;  %v568_v55 = vpop.f32.mrb[22].mxu0  ;;  %v761_v56 = vpop.f32.mrb[22].mxu1 }
 0x110   : > { %v1007_v57 = vadd.f32 %v1006_v43, %v906_v49  ;;  %v1069_v58 = vadd.f32 %v1068_v44, %v908_v50  ;;  %v910_v59 = vmax.f32 %v568_v55, 0.0  ;;  %v912_v60 = vmax.f32 %v761_v56, 0.0  ;;  %v570_v61 = vpop.f32.mrb[23].mxu0  ;;  %v763_v62 = vpop.f32.mrb[23].mxu1 }
 0x111   : > { %v1038_v63 = vadd.f32 %v1037_v45, %v907_v53  ;;  %v1100_v0 = vadd.f32 %v1099_v46, %v909_v54  ;;  %v911_v1 = vmax.f32 %v570_v61, 0.0  ;;  %v913_v2 = vmax.f32 %v763_v62, 0.0 }
 0x112   : > { %v1008_v3 = vadd.f32 %v1007_v57, %v910_v59  ;;  %v1070_v4 = vadd.f32 %v1069_v58, %v912_v60 }
 0x113   : > { %v1039_v5 = vadd.f32 %v1038_v63, %v911_v1  ;;  %v1101_v6 = vadd.f32 %v1100_v0, %v913_v2 }
 0x115   : > { %v574_v7 = vpop.f32.mrb[24].mxu0  ;;  %v767_v8 = vpop.f32.mrb[24].mxu1 }
 0x116   : > { %v914_v9 = vmax.f32 %v574_v7, 0.0  ;;  %v916_v10 = vmax.f32 %v767_v8, 0.0  ;;  %v576_v11 = vpop.f32.mrb[25].mxu0  ;;  %v769_v12 = vpop.f32.mrb[25].mxu1 }
 0x117   : > { %v915_v13 = vmax.f32 %v576_v11, 0.0  ;;  %v917_v14 = vmax.f32 %v769_v12, 0.0  ;;  %v578_v15 = vpop.f32.mrb[26].mxu0  ;;  %v771_v16 = vpop.f32.mrb[26].mxu1 }
 0x118   : > { %v1009_v17 = vadd.f32 %v1008_v3, %v914_v9  ;;  %v1071_v18 = vadd.f32 %v1070_v4, %v916_v10  ;;  %v918_v19 = vmax.f32 %v578_v15, 0.0  ;;  %v920_v20 = vmax.f32 %v771_v16, 0.0  ;;  %v580_v21 = vpop.f32.mrb[27].mxu0  ;;  %v773_v22 = vpop.f32.mrb[27].mxu1 }
 0x119   : > { %v1040_v23 = vadd.f32 %v1039_v5, %v915_v13  ;;  %v1102_v24 = vadd.f32 %v1101_v6, %v917_v14  ;;  %v919_v25 = vmax.f32 %v580_v21, 0.0  ;;  %v921_v26 = vmax.f32 %v773_v22, 0.0 }
 0x11a   : > { %v1010_v27 = vadd.f32 %v1009_v17, %v918_v19  ;;  %v1072_v28 = vadd.f32 %v1071_v18, %v920_v20 }
 0x11b   : > { %v1041_v29 = vadd.f32 %v1040_v23, %v919_v25  ;;  %v1103_v30 = vadd.f32 %v1102_v24, %v921_v26 }
 0x11d   : > { %v584_v31 = vpop.f32.mrb[28].mxu0  ;;  %v777_v32 = vpop.f32.mrb[28].mxu1 }
 0x11e   : > { %v922_v33 = vmax.f32 %v584_v31, 0.0  ;;  %v924_v34 = vmax.f32 %v777_v32, 0.0  ;;  %v586_v35 = vpop.f32.mrb[29].mxu0  ;;  %v779_v36 = vpop.f32.mrb[29].mxu1 }
 0x11f   : > { %v923_v37 = vmax.f32 %v586_v35, 0.0  ;;  %v925_v38 = vmax.f32 %v779_v36, 0.0  ;;  %v588_v39 = vpop.f32.mrb[30].mxu0  ;;  %v781_v40 = vpop.f32.mrb[30].mxu1 }
 0x120   : > { %v1011_v41 = vadd.f32 %v1010_v27, %v922_v33  ;;  %v1073_v42 = vadd.f32 %v1072_v28, %v924_v34  ;;  %v926_v43 = vmax.f32 %v588_v39, 0.0  ;;  %v928_v44 = vmax.f32 %v781_v40, 0.0  ;;  %v590_v45 = vpop.f32.mrb[31].mxu0  ;;  %v783_v46 = vpop.f32.mrb[31].mxu1 }
 0x121   : > { %v1042_v47 = vadd.f32 %v1041_v29, %v923_v37  ;;  %v1104_v48 = vadd.f32 %v1103_v30, %v925_v38  ;;  %v927_v49 = vmax.f32 %v590_v45, 0.0  ;;  %v929_v50 = vmax.f32 %v783_v46, 0.0 }
 0x122   : > { %v1012_v51 = vadd.f32 %v1011_v41, %v926_v43  ;;  %v1074_v52 = vadd.f32 %v1073_v42, %v928_v44 }
 0x123   : > { %v1043_v53 = vadd.f32 %v1042_v47, %v927_v49  ;;  %v1105_v54 = vadd.f32 %v1104_v48, %v929_v50 }
 0x125   : > { %v594_v55 = vpop.f32.mrb[32].mxu0  ;;  %v787_v56 = vpop.f32.mrb[32].mxu1 }
 0x126   : > { %v930_v57 = vmax.f32 %v594_v55, 0.0  ;;  %v932_v58 = vmax.f32 %v787_v56, 0.0  ;;  %v596_v59 = vpop.f32.mrb[33].mxu0  ;;  %v789_v60 = vpop.f32.mrb[33].mxu1 }
 0x127   : > { %v931_v61 = vmax.f32 %v596_v59, 0.0  ;;  %v933_v62 = vmax.f32 %v789_v60, 0.0  ;;  %v598_v63 = vpop.f32.mrb[34].mxu0  ;;  %v791_v0 = vpop.f32.mrb[34].mxu1 }
 0x128   : > { %v1013_v1 = vadd.f32 %v1012_v51, %v930_v57  ;;  %v1075_v2 = vadd.f32 %v1074_v52, %v932_v58  ;;  %v934_v3 = vmax.f32 %v598_v63, 0.0  ;;  %v936_v4 = vmax.f32 %v791_v0, 0.0  ;;  %v600_v5 = vpop.f32.mrb[35].mxu0  ;;  %v793_v6 = vpop.f32.mrb[35].mxu1 }
 0x129   : > { %v1044_v7 = vadd.f32 %v1043_v53, %v931_v61  ;;  %v1106_v8 = vadd.f32 %v1105_v54, %v933_v62  ;;  %v935_v9 = vmax.f32 %v600_v5, 0.0  ;;  %v937_v10 = vmax.f32 %v793_v6, 0.0 }
 0x12a   : > { %v1014_v11 = vadd.f32 %v1013_v1, %v934_v3  ;;  %v1076_v12 = vadd.f32 %v1075_v2, %v936_v4 }
 0x12b   : > { %v1045_v13 = vadd.f32 %v1044_v7, %v935_v9  ;;  %v1107_v14 = vadd.f32 %v1106_v8, %v937_v10 }
 0x12d   : > { %v604_v15 = vpop.f32.mrb[36].mxu0  ;;  %v797_v16 = vpop.f32.mrb[36].mxu1 }
 0x12e   : > { %v938_v17 = vmax.f32 %v604_v15, 0.0  ;;  %v940_v18 = vmax.f32 %v797_v16, 0.0  ;;  %v606_v19 = vpop.f32.mrb[37].mxu0  ;;  %v799_v20 = vpop.f32.mrb[37].mxu1 }
 0x12f   : > { %v939_v21 = vmax.f32 %v606_v19, 0.0  ;;  %v941_v22 = vmax.f32 %v799_v20, 0.0  ;;  %v608_v23 = vpop.f32.mrb[38].mxu0  ;;  %v801_v24 = vpop.f32.mrb[38].mxu1 }
 0x130   : > { %v1015_v25 = vadd.f32 %v1014_v11, %v938_v17  ;;  %v1077_v26 = vadd.f32 %v1076_v12, %v940_v18  ;;  %v942_v27 = vmax.f32 %v608_v23, 0.0  ;;  %v944_v28 = vmax.f32 %v801_v24, 0.0  ;;  %v610_v29 = vpop.f32.mrb[39].mxu0  ;;  %v803_v30 = vpop.f32.mrb[39].mxu1 }
 0x131   : > { %v1046_v31 = vadd.f32 %v1045_v13, %v939_v21  ;;  %v1108_v32 = vadd.f32 %v1107_v14, %v941_v22  ;;  %v943_v33 = vmax.f32 %v610_v29, 0.0  ;;  %v945_v34 = vmax.f32 %v803_v30, 0.0 }
 0x132   : > { %v1016_v35 = vadd.f32 %v1015_v25, %v942_v27  ;;  %v1078_v36 = vadd.f32 %v1077_v26, %v944_v28 }
 0x133   : > { %v1047_v37 = vadd.f32 %v1046_v31, %v943_v33  ;;  %v1109_v38 = vadd.f32 %v1108_v32, %v945_v34 }
 0x135   : > { %v614_v39 = vpop.f32.mrb[40].mxu0  ;;  %v807_v40 = vpop.f32.mrb[40].mxu1 }
 0x136   : > { %v946_v41 = vmax.f32 %v614_v39, 0.0  ;;  %v948_v42 = vmax.f32 %v807_v40, 0.0  ;;  %v616_v43 = vpop.f32.mrb[41].mxu0  ;;  %v809_v44 = vpop.f32.mrb[41].mxu1 }
 0x137   : > { %v947_v45 = vmax.f32 %v616_v43, 0.0  ;;  %v949_v46 = vmax.f32 %v809_v44, 0.0  ;;  %v618_v47 = vpop.f32.mrb[42].mxu0  ;;  %v811_v48 = vpop.f32.mrb[42].mxu1 }
 0x138   : > { %v1017_v49 = vadd.f32 %v1016_v35, %v946_v41  ;;  %v1079_v50 = vadd.f32 %v1078_v36, %v948_v42  ;;  %v950_v51 = vmax.f32 %v618_v47, 0.0  ;;  %v952_v52 = vmax.f32 %v811_v48, 0.0  ;;  %v620_v53 = vpop.f32.mrb[43].mxu0  ;;  %v813_v54 = vpop.f32.mrb[43].mxu1 }
 0x139   : > { %v1048_v55 = vadd.f32 %v1047_v37, %v947_v45  ;;  %v1110_v56 = vadd.f32 %v1109_v38, %v949_v46  ;;  %v951_v57 = vmax.f32 %v620_v53, 0.0  ;;  %v953_v58 = vmax.f32 %v813_v54, 0.0 }
 0x13a   : > { %v1018_v59 = vadd.f32 %v1017_v49, %v950_v51  ;;  %v1080_v60 = vadd.f32 %v1079_v50, %v952_v52 }
 0x13b   : > { %v1049_v61 = vadd.f32 %v1048_v55, %v951_v57  ;;  %v1111_v62 = vadd.f32 %v1110_v56, %v953_v58 }
 0x13d   : > { %v624_v63 = vpop.f32.mrb[44].mxu0  ;;  %v817_v0 = vpop.f32.mrb[44].mxu1 }
 0x13e   : > { %v954_v1 = vmax.f32 %v624_v63, 0.0  ;;  %v956_v2 = vmax.f32 %v817_v0, 0.0  ;;  %v626_v3 = vpop.f32.mrb[45].mxu0  ;;  %v819_v4 = vpop.f32.mrb[45].mxu1 }
 0x13f   : > { %v955_v5 = vmax.f32 %v626_v3, 0.0  ;;  %v957_v6 = vmax.f32 %v819_v4, 0.0  ;;  %v628_v7 = vpop.f32.mrb[46].mxu0  ;;  %v821_v8 = vpop.f32.mrb[46].mxu1 }
 0x140   : > { %v1019_v9 = vadd.f32 %v1018_v59, %v954_v1  ;;  %v1081_v10 = vadd.f32 %v1080_v60, %v956_v2  ;;  %v958_v11 = vmax.f32 %v628_v7, 0.0  ;;  %v960_v12 = vmax.f32 %v821_v8, 0.0  ;;  %v630_v13 = vpop.f32.mrb[47].mxu0  ;;  %v823_v14 = vpop.f32.mrb[47].mxu1 }
 0x141   : > { %v1050_v15 = vadd.f32 %v1049_v61, %v955_v5  ;;  %v1112_v16 = vadd.f32 %v1111_v62, %v957_v6  ;;  %v959_v17 = vmax.f32 %v630_v13, 0.0  ;;  %v961_v18 = vmax.f32 %v823_v14, 0.0 }
 0x142   : > { %v1020_v19 = vadd.f32 %v1019_v9, %v958_v11  ;;  %v1082_v20 = vadd.f32 %v1081_v10, %v960_v12 }
 0x143   : > { %v1051_v21 = vadd.f32 %v1050_v15, %v959_v17  ;;  %v1113_v22 = vadd.f32 %v1112_v16, %v961_v18 }
 0x145   : > { %v634_v23 = vpop.f32.mrb[48].mxu0  ;;  %v827_v24 = vpop.f32.mrb[48].mxu1 }
 0x146   : > { %v962_v25 = vmax.f32 %v634_v23, 0.0  ;;  %v964_v26 = vmax.f32 %v827_v24, 0.0  ;;  %v636_v27 = vpop.f32.mrb[49].mxu0  ;;  %v829_v28 = vpop.f32.mrb[49].mxu1 }
 0x147   : > { %v963_v29 = vmax.f32 %v636_v27, 0.0  ;;  %v965_v30 = vmax.f32 %v829_v28, 0.0  ;;  %v638_v31 = vpop.f32.mrb[50].mxu0  ;;  %v831_v32 = vpop.f32.mrb[50].mxu1 }
 0x148   : > { %v1021_v33 = vadd.f32 %v1020_v19, %v962_v25  ;;  %v1083_v34 = vadd.f32 %v1082_v20, %v964_v26  ;;  %v966_v35 = vmax.f32 %v638_v31, 0.0  ;;  %v968_v36 = vmax.f32 %v831_v32, 0.0  ;;  %v640_v37 = vpop.f32.mrb[51].mxu0  ;;  %v833_v38 = vpop.f32.mrb[51].mxu1 }
 0x149   : > { %v1052_v39 = vadd.f32 %v1051_v21, %v963_v29  ;;  %v1114_v40 = vadd.f32 %v1113_v22, %v965_v30  ;;  %v967_v41 = vmax.f32 %v640_v37, 0.0  ;;  %v969_v42 = vmax.f32 %v833_v38, 0.0 }
 0x14a   : > { %v1022_v43 = vadd.f32 %v1021_v33, %v966_v35  ;;  %v1084_v44 = vadd.f32 %v1083_v34, %v968_v36 }
 0x14b   : > { %v1053_v45 = vadd.f32 %v1052_v39, %v967_v41  ;;  %v1115_v46 = vadd.f32 %v1114_v40, %v969_v42 }
 0x14d   : > { %v644_v47 = vpop.f32.mrb[52].mxu0  ;;  %v837_v48 = vpop.f32.mrb[52].mxu1 }
 0x14e   : > { %v970_v49 = vmax.f32 %v644_v47, 0.0  ;;  %v972_v50 = vmax.f32 %v837_v48, 0.0  ;;  %v646_v51 = vpop.f32.mrb[53].mxu0  ;;  %v839_v52 = vpop.f32.mrb[53].mxu1 }
 0x14f   : > { %v971_v53 = vmax.f32 %v646_v51, 0.0  ;;  %v973_v54 = vmax.f32 %v839_v52, 0.0  ;;  %v648_v55 = vpop.f32.mrb[54].mxu0  ;;  %v841_v56 = vpop.f32.mrb[54].mxu1 }
 0x150   : > { %v1023_v57 = vadd.f32 %v1022_v43, %v970_v49  ;;  %v1085_v58 = vadd.f32 %v1084_v44, %v972_v50  ;;  %v974_v59 = vmax.f32 %v648_v55, 0.0  ;;  %v976_v60 = vmax.f32 %v841_v56, 0.0  ;;  %v650_v61 = vpop.f32.mrb[55].mxu0  ;;  %v843_v62 = vpop.f32.mrb[55].mxu1 }
 0x151   : > { %v1054_v63 = vadd.f32 %v1053_v45, %v971_v53  ;;  %v1116_v0 = vadd.f32 %v1115_v46, %v973_v54  ;;  %v975_v1 = vmax.f32 %v650_v61, 0.0  ;;  %v977_v2 = vmax.f32 %v843_v62, 0.0 }
 0x152   : > { %v1024_v3 = vadd.f32 %v1023_v57, %v974_v59  ;;  %v1086_v4 = vadd.f32 %v1085_v58, %v976_v60 }
 0x153   : > { %v1055_v5 = vadd.f32 %v1054_v63, %v975_v1  ;;  %v1117_v6 = vadd.f32 %v1116_v0, %v977_v2 }
 0x155   : > { %v654_v7 = vpop.f32.mrb[56].mxu0  ;;  %v847_v8 = vpop.f32.mrb[56].mxu1 }
 0x156   : > { %v978_v9 = vmax.f32 %v654_v7, 0.0  ;;  %v980_v10 = vmax.f32 %v847_v8, 0.0  ;;  %v656_v11 = vpop.f32.mrb[57].mxu0  ;;  %v849_v12 = vpop.f32.mrb[57].mxu1 }
 0x157   : > { %v979_v13 = vmax.f32 %v656_v11, 0.0  ;;  %v981_v14 = vmax.f32 %v849_v12, 0.0  ;;  %v658_v15 = vpop.f32.mrb[58].mxu0  ;;  %v851_v16 = vpop.f32.mrb[58].mxu1 }
 0x158   : > { %v1025_v17 = vadd.f32 %v1024_v3, %v978_v9  ;;  %v1087_v18 = vadd.f32 %v1086_v4, %v980_v10  ;;  %v982_v19 = vmax.f32 %v658_v15, 0.0  ;;  %v984_v20 = vmax.f32 %v851_v16, 0.0  ;;  %v660_v21 = vpop.f32.mrb[59].mxu0  ;;  %v853_v22 = vpop.f32.mrb[59].mxu1 }
 0x159   : > { %v1056_v23 = vadd.f32 %v1055_v5, %v979_v13  ;;  %v1118_v24 = vadd.f32 %v1117_v6, %v981_v14  ;;  %v983_v25 = vmax.f32 %v660_v21, 0.0  ;;  %v985_v26 = vmax.f32 %v853_v22, 0.0 }
 0x15a   : > { %v1026_v27 = vadd.f32 %v1025_v17, %v982_v19  ;;  %v1088_v28 = vadd.f32 %v1087_v18, %v984_v20  ;;  %v1882_v3 = vmov 1966171168   ;;  %v1174_v5 = vlaneseq }
 0x15b   : > { %v1057_v29 = vadd.f32 %v1056_v23, %v983_v25  ;;  %v1119_v30 = vadd.f32 %v1118_v24, %v985_v26  ;;  %v1172_v4 = vunpack.c.l.s4 %v1882_v3 }
 0x15c   : > { %v1175_v14 = vshrl.u32 %v1174_v5, 7  ;;  %vm1196_vm2 = vcmp.lt.s32.totalorder %v1174_v5, 512 }
 0x15d   : > { %v664_v31 = vpop.f32.mrb[60].mxu0  ;;  %v857_v32 = vpop.f32.mrb[60].mxu1  ;;  %v1173_v13 = vunpack.c.0.s8 %v1172_v4 }
 0x15e   : > { %v986_v33 = vmax.f32 %v664_v31, 0.0  ;;  %v988_v34 = vmax.f32 %v857_v32, 0.0  ;;  %v666_v35 = vpop.f32.mrb[61].mxu0  ;;  %v859_v36 = vpop.f32.mrb[61].mxu1 }
 0x15f   : > { %v987_v37 = vmax.f32 %v666_v35, 0.0  ;;  %v989_v38 = vmax.f32 %v859_v36, 0.0  ;;  %v668_v39 = vpop.f32.mrb[62].mxu0  ;;  %v861_v40 = vpop.f32.mrb[62].mxu1  ;;  %v1176_v23 = vsub.s32 %v1173_v13, %v1175_v14 }
 0x160   : > { %v1027_v41 = vadd.f32 %v1026_v27, %v986_v33  ;;  %v1089_v42 = vadd.f32 %v1088_v28, %v988_v34  ;;  %v990_v43 = vmax.f32 %v668_v39, 0.0  ;;  %v992_v44 = vmax.f32 %v861_v40, 0.0  ;;  %v670_v45 = vpop.f32.mrb[63].mxu0  ;;  %v863_v46 = vpop.f32.mrb[63].mxu1 }
 0x161   : > { %v1058_v47 = vadd.f32 %v1057_v29, %v987_v37  ;;  %v1120_v48 = vadd.f32 %v1119_v30, %v989_v38  ;;  %v991_v49 = vmax.f32 %v670_v45, 0.0  ;;  %v993_v50 = vmax.f32 %v863_v46, 0.0  ;;  %v1267_v37 = vld [vmem:[%s2170_s3] sm:$0x1] }
 0x162   : > { %v1028_v51 = vadd.f32 %v1027_v41, %v990_v43  ;;  %v1090_v52 = vadd.f32 %v1089_v42, %v992_v44 }
 0x163   : > { %v1059_v53 = vadd.f32 %v1058_v47, %v991_v49  ;;  %v1121_v54 = vadd.f32 %v1120_v48, %v993_v50 }
 0x164   : > { %v1137_v55 = vrot.slane %v1028_v51, 4  ;;  %v1149_v56 = vrot.slane %v1090_v52, 4 }
 0x165   : > { %v1143_v57 = vrot.slane %v1059_v53, 4  ;;  %v1155_v58 = vrot.slane %v1121_v54, 4 }
 0x166   : > { %v1138_v59 = vadd.f32 %v1137_v55, %v1028_v51  ;;  %v1150_v60 = vadd.f32 %v1149_v56, %v1090_v52 }
 0x167   : > { %v1144_v61 = vadd.f32 %v1143_v57, %v1059_v53  ;;  %v1156_v62 = vadd.f32 %v1155_v58, %v1121_v54 }
 0x168   : > { %v1139_v63 = vrot.slane %v1138_v59, 2  ;;  %v1151_v0 = vrot.slane %v1150_v60, 2 }
 0x169   : > { %v1145_v1 = vrot.slane %v1144_v61, 2  ;;  %v1157_v2 = vrot.slane %v1156_v62, 2 }
 0x16a   : > { %v1140_v6 = vadd.f32 %v1139_v63, %v1138_v59  ;;  %v1152_v7 = vadd.f32 %v1151_v0, %v1150_v60 }
 0x16b   : > { %v1146_v8 = vadd.f32 %v1145_v1, %v1144_v61  ;;  %v1158_v9 = vadd.f32 %v1157_v2, %v1156_v62 }
 0x16c   : > { %v1141_v10 = vrot.slane %v1140_v6, 1  ;;  %v1153_v11 = vrot.slane %v1152_v7, 1 }
 0x16d   : > { %v1147_v12 = vrot.slane %v1146_v8, 1  ;;  %v1159_v15 = vrot.slane %v1158_v9, 1 }
 0x16e   : > { %v1142_v16 = vadd.f32 %v1141_v10, %v1140_v6  ;;  %v1154_v17 = vadd.f32 %v1153_v11, %v1152_v7 }
 0x16f   : > { %v1148_v18 = vadd.f32 %v1147_v12, %v1146_v8  ;;  %v1160_v19 = vadd.f32 %v1159_v15, %v1158_v9 }
 0x170   : > { %v1161_v20 = vmul.f32 0.00390625, %v1142_v16  ;;  %v1163_v21 = vmul.f32 0.00390625, %v1154_v17 }
 0x171   : > { %v1162_v22 = vmul.f32 0.00390625, %v1148_v18  ;;  %v1164_v24 = vmul.f32 0.00390625, %v1160_v19 }
 0x172   : > { %v1199_v29 = vpack.c.bf16 %v1161_v20, %v1161_v20  ;;  %v1201_v30 = vpack.c.bf16 %v1163_v21, %v1163_v21 }
 0x173   : > { %v1169_v25 = vcombine.low %v1161_v20, %v1162_v22  ;;  %v1200_v26 = vpack.c.bf16 %v1162_v22, %v1162_v22  ;;  %v1170_v27 = vcombine.low %v1163_v21, %v1164_v24  ;;  %v1202_v28 = vpack.c.bf16 %v1164_v24, %v1164_v24 }
 0x175   : > { %v1177_v31 = vrot.slane %v1169_v25, %v1176_v23  ;;  %1492 = vmatprep.mubr.bf16.mxu0 %v1200_v26  ;;  %v1184_v32 = vrot.slane %v1170_v27, %v1176_v23  ;;  %1532 = vmatprep.mubr.bf16.mxu1 %v1202_v28 }
 0x176   : > { %1493 = vmatmul.mubr.bf16.vlgmr.msra.gmra.mrb[64].mxu0 %v1199_v29  ;;  %1533 = vmatmul.mubr.bf16.vlgmr.msra.gmra.mrb[64].mxu1 %v1201_v30 }
 0x177   : > { %v1185_v33 = vcombine.low %v1177_v31, %v1184_v32 }
 0x179   : > { %v1192_v34 = vrot.slane %v1185_v33, %v1176_v23 }
 0x17b   : > { %1198 = vst.msk [vmem:[%s249_s26] sm:$0xf] %vm1196_vm2, %v1192_v34 }
 0x249   : > { %v1743_v35 = vpop.f32.mrb[64].mxu0  ;;  %v1765_v36 = vpop.f32.mrb[64].mxu1 }
 0x24a   : > { %v1744_v38 = vpop.f32.mrb[65].mxu0  ;;  %v1766_v39 = vpop.f32.mrb[65].mxu1 }
 0x24b   : > { %v1745_v40 = vadd.f32 %v1744_v38, %v1743_v35  ;;  %v1767_v41 = vadd.f32 %v1766_v39, %v1765_v36  ;;  %v1746_v42 = vpop.f32.mrb[66].mxu0  ;;  %v1768_v43 = vpop.f32.mrb[66].mxu1 }
 0x24c   : > { %v1747_v44 = vpop.f32.mrb[67].mxu0  ;;  %v1769_v45 = vpop.f32.mrb[67].mxu1 }
 0x24d   : > { %v1495_v46 = vadd.f32 %v1745_v40, %v1267_v37 }
 0x24f   : > { %v1535_v47 = vadd.f32 %v1767_v41, %v1495_v46 }
 0x251   : > { %1540 = vst [vmem:[%s252_s6] sm:$0x1] %v1535_v47 }
 0x252 PF: > { %s16_s20 = sadd.s32 1, %s1879_s20   ;;  %s2173_s18 = smov %s1875_s19 }
 0x253   : > { %p13_p6 = scmp.ge.s32.totalorder %s16_s20, 4   ;;  %s2174_s19 = smov %s2176_s21 }
 0x255   :  { %15 = sbr.rel (!%p13_p6) target bundleno = 2 (0x2), region = 86 }

</bundles_post_ra>
